<compile_context>
chip_gen: v5e
topology: v5e:2x2
jax: 0.10.0
libtpu: 0.0.40
codegen_flags: <defaults>
</compile_context>

<pallas_src>
import functools

import jax
import jax.numpy as jnp
from jax import lax
from jax.experimental import pallas as pl
from jax.experimental.pallas import tpu as pltpu

NUM_FILTER_OPTION = 2    # decoder output size (from the module)
OUT_LANES = 128          # lane-dense padded decoder output width
_STATIC_UNROLL_MAX = 8   # static-unroll threshold for the recurrence


def _lstm_decoder_kernel(x_ref, wih_ref, whh_ref, biases_ref, dec_ref,
                         out_ref, *scratch, num_steps, hidden_size):
    """Full num_steps recurrence in VMEM.

    wih/whh/biases arrive with the i/f/o gate columns pre-scaled by 0.5 so
    sigmoid is one full-vreg tanh + one full-vreg affine.  whh/beff have the
    linear decoder feedback folded in, so each recurrent step is exactly one
    (1,H)@(H,4H) matmul on the serial chain.
    """
    H = hidden_size
    hs_ref = scratch[0] if scratch else None

    whh_eff = whh_ref[...]                # (H, 4H), column-scaled, fused
    mxu_dtype = whh_eff.dtype
    b0 = biases_ref[0:1, :]               # (1, 4H) step-0 bias (scaled)
    b_eff = biases_ref[1:2, :]            # (1, 4H) recurrent bias (scaled)
    wdec = dec_ref[0:H, :]                # (H, 128) lane-dense decoder weight
    bdec = dec_ref[H:H + 1, :]            # (1, 128)

    def gate_split(gates_scaled):
        th = jnp.tanh(gates_scaled)       # ONE full-vreg tanh per step (EUP)
        sg = 0.5 * th + 0.5               # full-width affine, then lane-slice
        i_g = sg[:, 0 * H:1 * H]          # == sigmoid(gate_i)
        f_g = sg[:, 1 * H:2 * H]          # == sigmoid(gate_f)
        g_g = th[:, 2 * H:3 * H]          # == tanh(gate_g)
        o_g = sg[:, 3 * H:4 * H]          # == sigmoid(gate_o)
        return i_g, f_g, g_g, o_g

    # ---- step 0: real input x.  h0 == c0 == 0 (module's init_hidden), so the
    #      h0 @ whh term vanishes and c = i * g exactly (no f*c_prev, no zeros
    #      materialization on the critical path).
    gates0 = (jnp.dot(x_ref[...], wih_ref[...],
                      preferred_element_type=jnp.float32) + b0)
    i_g, _, g_g, o_g = gate_split(gates0)
    c = i_g * g_g
    h = o_g * jnp.tanh(c)

    def recur(h_prev, c_prev):
        gates = (jnp.dot(h_prev.astype(mxu_dtype), whh_eff,
                         preferred_element_type=jnp.float32) + b_eff)
        i_g, f_g, g_g, o_g = gate_split(gates)
        c_new = f_g * c_prev + i_g * g_g
        h_new = o_g * jnp.tanh(c_new)
        return h_new, c_new

    if num_steps <= _STATIC_UNROLL_MAX:
        # Register-resident hidden states: no per-step masked VMEM stores.
        h_rows = [h]
        for _ in range(1, num_steps):
            h, c = recur(h, c)
            h_rows.append(h)
        hs = h_rows[0] if num_steps == 1 else jnp.concatenate(h_rows, axis=0)
    else:
        # Bounded code size for long rollouts (dynamic-row stores into VMEM).
        hs_ref[0:1, :] = h

        def body(t, carry):
            h_t, c_t = recur(*carry)
            hs_ref[pl.ds(t, 1), :] = h_t
            return (h_t, c_t)

        lax.fori_loop(1, num_steps, body, (h, c), unroll=8)
        hs = hs_ref[...]

    # ---- batched decoder: one (num_steps, H) @ (H, 128) matmul, stored as a
    #      lane-dense (num_steps, 128) block (wrapper slices [:, :2]).
    out_ref[...] = (jnp.dot(hs.astype(jnp.float32), wdec,
                            preferred_element_type=jnp.float32) + bdec)


def network_forward(x, params, *, num_steps, hidden_size,
                    mxu_dtype=jnp.float32):
    """x: (1, input_size) float32.  Returns (num_steps, 2) float32.

    mxu_dtype=jnp.bfloat16 casts ONLY the matmul operands (wih/whh/x/h) for a
    single-pass MXU matmul on v6e/v7x; gate math stays f32 (v5e-safe).
    """
    wih, whh, bih, bhh, wdec, bdec = params
    H = hidden_size
    input_size = wih.shape[0]
    if num_steps > 1 and input_size != NUM_FILTER_OPTION:
        raise ValueError("decoder->LSTM feedback requires input_size == "
                         f"{NUM_FILTER_OPTION} when num_steps > 1")

    f32 = jnp.float32
    b0 = (bih + bhh).astype(f32)                      # (1, 4H) step-0 bias
    if num_steps > 1:
        whh_eff = whh + wdec @ wih                    # fold linear feedback
        b_eff = b0 + bdec @ wih
    else:
        whh_eff, b_eff = whh, b0                      # loop body never runs

    # Fold the 0.5 pre-scale of sigmoid(z)=0.5*tanh(z/2)+0.5 into the gate
    # columns (gate order i, f, g, o; only g keeps scale 1).
    col_scale = jnp.concatenate(
        [jnp.full((1, H), 0.5, f32), jnp.full((1, H), 0.5, f32),
         jnp.full((1, H), 1.0, f32), jnp.full((1, H), 0.5, f32)], axis=1)
    wih_s = (wih * col_scale).astype(mxu_dtype)
    whh_s = (whh_eff * col_scale).astype(mxu_dtype)
    biases = jnp.concatenate(
        [b0 * col_scale, b_eff * col_scale], axis=0).astype(f32)   # (2, 4H)

    # Lane-dense decoder: zero-pad to 128 output lanes, pack weight + bias.
    wdec_p = jnp.zeros((H, OUT_LANES), f32).at[:, :NUM_FILTER_OPTION].set(
        wdec.astype(f32))
    bdec_p = jnp.zeros((1, OUT_LANES), f32).at[:, :NUM_FILTER_OPTION].set(
        bdec.astype(f32))
    dec = jnp.concatenate([wdec_p, bdec_p], axis=0)                # (H+1, 128)

    vmem = pl.BlockSpec(memory_space=pltpu.MemorySpace.VMEM)
    kernel = functools.partial(_lstm_decoder_kernel,
                               num_steps=num_steps, hidden_size=H)
    # hs scratch only needed for the long-rollout (fori_loop) path.
    scratch_shapes = ([] if num_steps <= _STATIC_UNROLL_MAX
                      else [pltpu.VMEM((num_steps, H), f32)])

    out_padded = pl.pallas_call(
        kernel,
        out_shape=jax.ShapeDtypeStruct((num_steps, OUT_LANES), f32),
        in_specs=[vmem] * 5,
        out_specs=vmem,
        scratch_shapes=scratch_shapes,
    )(x.astype(mxu_dtype), wih_s, whh_s, biases, dec)
    return out_padded[:, :NUM_FILTER_OPTION]


def init_params(key, input_size, hidden_size):
    """Deterministic init matching the PyTorch module's init_weights."""
    k1, k2, k3 = jax.random.split(key, 3)
    H = hidden_size
    # LSTMCell: weights ~ N(0, 0.02), biases = 0.01.  Stored transposed.
    wih = 0.02 * jax.random.normal(k1, (input_size, 4 * H), jnp.float32)
    whh = 0.02 * jax.random.normal(k2, (H, 4 * H), jnp.float32)
    bih = jnp.full((1, 4 * H), 0.01, jnp.float32)
    bhh = jnp.full((1, 4 * H), 0.01, jnp.float32)
    # Decoder: xavier_uniform_ on torch weight (out=2, in=H); bias = 0.01.
    bound = (6.0 / (H + NUM_FILTER_OPTION)) ** 0.5
    wdec = jax.random.uniform(k3, (H, NUM_FILTER_OPTION), jnp.float32,
                              minval=-bound, maxval=bound)
    bdec = jnp.full((1, NUM_FILTER_OPTION), 0.01, jnp.float32)
    return wih, whh, bih, bhh, wdec, bdec


def _reference(x, params, num_steps, hidden_size):
    """Pure-JAX reference with the ORIGINAL (unfused) torch semantics."""
    wih, whh, bih, bhh, wdec, bdec = params
    H = hidden_size
    h = jnp.zeros((1, H), jnp.float32)
    c = jnp.zeros((1, H), jnp.float32)
    inp = x.astype(jnp.float32)
    outs = []
    for _ in range(num_steps):
        gates = inp @ wih + bih + h @ whh + bhh
        i_g = jax.nn.sigmoid(gates[:, 0 * H:1 * H])
        f_g = jax.nn.sigmoid(gates[:, 1 * H:2 * H])
        g_g = jnp.tanh(gates[:, 2 * H:3 * H])
        o_g = jax.nn.sigmoid(gates[:, 3 * H:4 * H])
        c = f_g * c + i_g * g_g
        h = o_g * jnp.tanh(c)
        out = h @ wdec + bdec
        outs.append(out)
        inp = out
    return jnp.concatenate(outs, axis=0)


if __name__ == "__main__":
    # Small, module-consistent shapes: batch=1 (fixed by init_hidden),
    # input_size=2 (so the decoder->LSTM feedback is well-typed), hidden=32.
    input_size = 2
    hidden_size = 32

    key = jax.random.PRNGKey(0)
    kp, kx = jax.random.split(key)
    params = init_params(kp, input_size, hidden_size)
    x = jax.random.normal(kx, (1, input_size), jnp.float32)

    # --- short rollout, f32 MXU operands (exact fold): tight tolerance ---
    num_steps = 3
    out = network_forward(x, params, num_steps=num_steps,
                          hidden_size=hidden_size)
    out = jax.block_until_ready(out)
    ref = _reference(x, params, num_steps, hidden_size)
    assert out.shape == (num_steps, NUM_FILTER_OPTION)
    assert jnp.allclose(out, ref, atol=1e-5, rtol=1e-4), (out, ref)

    # --- short rollout, bf16 MXU operands (v6e/v7x path): relaxed tolerance ---
    out_bf16 = network_forward(x, params, num_steps=num_steps,
                               hidden_size=hidden_size,
                               mxu_dtype=jnp.bfloat16)
    out_bf16 = jax.block_until_ready(out_bf16)
    assert jnp.allclose(out_bf16, ref, atol=2e-3, rtol=5e-2), (out_bf16, ref)

    # --- long rollout (fori_loop + VMEM hs scratch + lane-dense store) ---
    num_steps_long = 12
    out_long = network_forward(x, params, num_steps=num_steps_long,
                               hidden_size=hidden_size)
    out_long = jax.block_until_ready(out_long)
    ref_long = _reference(x, params, num_steps_long, hidden_size)
    assert out_long.shape == (num_steps_long, NUM_FILTER_OPTION)
    assert jnp.allclose(out_long, ref_long, atol=1e-5, rtol=1e-4), (
        out_long, ref_long)

    print("KERNEL_OK")
</pallas_src>

<mosaic_0001>
module attributes {stable_mosaic.version = 11 : i64} {
  func.func @_lstm_decoder_kernel(%arg0: memref<1x2xf32, #tpu.memory_space<vmem>>, %arg1: memref<2x128xf32, #tpu.memory_space<vmem>>, %arg2: memref<32x128xf32, #tpu.memory_space<vmem>>, %arg3: memref<2x128xf32, #tpu.memory_space<vmem>>, %arg4: memref<33x128xf32, #tpu.memory_space<vmem>>, %arg5: memref<3x128xf32, #tpu.memory_space<vmem>>) attributes {dimension_semantics = [], scalar_prefetch = 0 : i64, scratch_operands = 0 : i64, tpu.core_type = #tpu.core_type<tc>} {
    %c0 = arith.constant 0 : index
    %c0_0 = arith.constant 0 : index
    %0 = vector.load %arg2[%c0, %c0_0] : memref<32x128xf32, #tpu.memory_space<vmem>>, vector<32x128xf32>
    %c0_1 = arith.constant 0 : index
    %c0_2 = arith.constant 0 : index
    %1 = vector.load %arg3[%c0_1, %c0_2] : memref<2x128xf32, #tpu.memory_space<vmem>>, vector<1x128xf32>
    %c1 = arith.constant 1 : index
    %c0_3 = arith.constant 0 : index
    %2 = vector.load %arg3[%c1, %c0_3] : memref<2x128xf32, #tpu.memory_space<vmem>>, vector<1x128xf32>
    %c0_4 = arith.constant 0 : index
    %c0_5 = arith.constant 0 : index
    %3 = vector.load %arg4[%c0_4, %c0_5] : memref<33x128xf32, #tpu.memory_space<vmem>>, vector<32x128xf32>
    %c32 = arith.constant 32 : index
    %c0_6 = arith.constant 0 : index
    %4 = vector.load %arg4[%c32, %c0_6] : memref<33x128xf32, #tpu.memory_space<vmem>>, vector<1x128xf32>
    %c0_7 = arith.constant 0 : index
    %c0_8 = arith.constant 0 : index
    %5 = vector.load %arg0[%c0_7, %c0_8] : memref<1x2xf32, #tpu.memory_space<vmem>>, vector<1x2xf32>
    %c0_9 = arith.constant 0 : index
    %c0_10 = arith.constant 0 : index
    %6 = vector.load %arg1[%c0_9, %c0_10] : memref<2x128xf32, #tpu.memory_space<vmem>>, vector<2x128xf32>
    %cst = arith.constant dense<0.000000e+00> : vector<1x128xf32>
    %7 = tpu.matmul %5, %6, %cst {dimension_numbers = #tpu.dot_dimension_numbers<[1], [0], [0], [1], [0, 0, 1, 1], [], []>} : vector<1x2xf32>, vector<2x128xf32>, vector<1x128xf32> -> vector<1x128xf32>
    %8 = arith.addf %7, %1 : vector<1x128xf32>
    %9 = math.tanh %8 : vector<1x128xf32>
    %cst_11 = arith.constant 5.000000e-01 : f32
    %10 = vector.broadcast %cst_11 : f32 to vector<1x128xf32>
    %11 = arith.mulf %10, %9 : vector<1x128xf32>
    %cst_12 = arith.constant 5.000000e-01 : f32
    %12 = vector.broadcast %cst_12 : f32 to vector<1x128xf32>
    %13 = arith.addf %11, %12 : vector<1x128xf32>
    %14 = vector.extract_strided_slice %13 {offsets = [0, 0], sizes = [1, 32], strides = [1, 1]} : vector<1x128xf32> to vector<1x32xf32>
    %15 = vector.extract_strided_slice %9 {offsets = [0, 64], sizes = [1, 32], strides = [1, 1]} : vector<1x128xf32> to vector<1x32xf32>
    %16 = vector.extract_strided_slice %13 {offsets = [0, 96], sizes = [1, 32], strides = [1, 1]} : vector<1x128xf32> to vector<1x32xf32>
    %17 = arith.mulf %14, %15 : vector<1x32xf32>
    %18 = math.tanh %17 : vector<1x32xf32>
    %19 = arith.mulf %16, %18 : vector<1x32xf32>
    %cst_13 = arith.constant dense<0.000000e+00> : vector<1x128xf32>
    %20 = tpu.matmul %19, %0, %cst_13 {dimension_numbers = #tpu.dot_dimension_numbers<[1], [0], [0], [1], [0, 0, 1, 1], [], []>} : vector<1x32xf32>, vector<32x128xf32>, vector<1x128xf32> -> vector<1x128xf32>
    %21 = arith.addf %20, %2 : vector<1x128xf32>
    %22 = math.tanh %21 : vector<1x128xf32>
    %cst_14 = arith.constant 5.000000e-01 : f32
    %23 = vector.broadcast %cst_14 : f32 to vector<1x128xf32>
    %24 = arith.mulf %23, %22 : vector<1x128xf32>
    %cst_15 = arith.constant 5.000000e-01 : f32
    %25 = vector.broadcast %cst_15 : f32 to vector<1x128xf32>
    %26 = arith.addf %24, %25 : vector<1x128xf32>
    %27 = vector.extract_strided_slice %26 {offsets = [0, 0], sizes = [1, 32], strides = [1, 1]} : vector<1x128xf32> to vector<1x32xf32>
    %28 = vector.extract_strided_slice %26 {offsets = [0, 32], sizes = [1, 32], strides = [1, 1]} : vector<1x128xf32> to vector<1x32xf32>
    %29 = vector.extract_strided_slice %22 {offsets = [0, 64], sizes = [1, 32], strides = [1, 1]} : vector<1x128xf32> to vector<1x32xf32>
    %30 = vector.extract_strided_slice %26 {offsets = [0, 96], sizes = [1, 32], strides = [1, 1]} : vector<1x128xf32> to vector<1x32xf32>
    %31 = arith.mulf %28, %17 : vector<1x32xf32>
    %32 = arith.mulf %27, %29 : vector<1x32xf32>
    %33 = arith.addf %31, %32 : vector<1x32xf32>
    %34 = math.tanh %33 : vector<1x32xf32>
    %35 = arith.mulf %30, %34 : vector<1x32xf32>
    %cst_16 = arith.constant dense<0.000000e+00> : vector<1x128xf32>
    %36 = tpu.matmul %35, %0, %cst_16 {dimension_numbers = #tpu.dot_dimension_numbers<[1], [0], [0], [1], [0, 0, 1, 1], [], []>} : vector<1x32xf32>, vector<32x128xf32>, vector<1x128xf32> -> vector<1x128xf32>
    %37 = arith.addf %36, %2 : vector<1x128xf32>
    %38 = math.tanh %37 : vector<1x128xf32>
    %cst_17 = arith.constant 5.000000e-01 : f32
    %39 = vector.broadcast %cst_17 : f32 to vector<1x128xf32>
    %40 = arith.mulf %39, %38 : vector<1x128xf32>
    %cst_18 = arith.constant 5.000000e-01 : f32
    %41 = vector.broadcast %cst_18 : f32 to vector<1x128xf32>
    %42 = arith.addf %40, %41 : vector<1x128xf32>
    %43 = vector.extract_strided_slice %42 {offsets = [0, 0], sizes = [1, 32], strides = [1, 1]} : vector<1x128xf32> to vector<1x32xf32>
    %44 = vector.extract_strided_slice %42 {offsets = [0, 32], sizes = [1, 32], strides = [1, 1]} : vector<1x128xf32> to vector<1x32xf32>
    %45 = vector.extract_strided_slice %38 {offsets = [0, 64], sizes = [1, 32], strides = [1, 1]} : vector<1x128xf32> to vector<1x32xf32>
    %46 = vector.extract_strided_slice %42 {offsets = [0, 96], sizes = [1, 32], strides = [1, 1]} : vector<1x128xf32> to vector<1x32xf32>
    %47 = arith.mulf %44, %33 : vector<1x32xf32>
    %48 = arith.mulf %43, %45 : vector<1x32xf32>
    %49 = arith.addf %47, %48 : vector<1x32xf32>
    %50 = math.tanh %49 : vector<1x32xf32>
    %51 = arith.mulf %46, %50 : vector<1x32xf32>
    %52 = tpu.concatenate %19, %35, %51 in 0 : vector<1x32xf32>, vector<1x32xf32>, vector<1x32xf32> -> vector<3x32xf32>
    %cst_19 = arith.constant dense<0.000000e+00> : vector<3x128xf32>
    %53 = tpu.matmul %52, %3, %cst_19 {dimension_numbers = #tpu.dot_dimension_numbers<[1], [0], [0], [1], [0, 0, 1, 1], [], []>} : vector<3x32xf32>, vector<32x128xf32>, vector<3x128xf32> -> vector<3x128xf32>
    %54 = vector.broadcast %4 : vector<1x128xf32> to vector<3x128xf32>
    %55 = arith.addf %53, %54 : vector<3x128xf32>
    %c0_20 = arith.constant 0 : index
    %c0_21 = arith.constant 0 : index
    %56 = vector.load %arg5[%c0_20, %c0_21] : memref<3x128xf32, #tpu.memory_space<vmem>>, vector<3x128xf32>
    tpu.vector_store %arg5[%c0_20, %c0_21], %55 {strides = array<i32>} : memref<3x128xf32, #tpu.memory_space<vmem>>, vector<3x128xf32>,
    return
  }
}

</mosaic_0001>

<bundles_post_ra>
// kernel: tpu_custom_call.1
= control target key start
LH: loop header
LB: loop body
LE: loop exit
PB: predicated region body
PF: predicated region fallthrough
CT: control target
= control target key end

     0   :  { %10 = vsyncpa [#allocation3], 0  ;;  %s517_s0 = inlined_call_operand.hbm [shape: f32[1,2], index: 0, kind: input, shape index: {}]   ;;  %s518_s1 = inlined_call_operand.hbm [shape: f32[2,128], index: 1, kind: input, shape index: {}]   ;;  %s519_s2 = inlined_call_operand.hbm [shape: f32[32,128], index: 2, kind: input, shape index: {}]   ;;  %s520_s3 = inlined_call_operand.vmem [shape: f32[2,128], index: 3, kind: input, shape index: {}]   ;;  %s521_s4 = inlined_call_operand.hbm [shape: f32[33,128], index: 4, kind: input, shape index: {}]   ;;  %s522_s5 = inlined_call_operand.hbm [shape: f32[3,128], index: 5, kind: output, shape index: {}]  }
   0x1   :  { %11 = vsyncpa [#allocation6], 0 }
   0x2   :  { %12 = vsyncpa [#allocation9], 0  ;;  %s30_s20 = sshll.u32 %s518_s1, 4  ;;  %s31_s20 = int_to_ptr.hbm [resolvable:$true] %s30_s20 }
   0x3   :  { %13 = vsyncpa [#allocation4], 0  ;;  %s440_s21 = smov [#allocation5]   ;;  %s19_s25 = sshll.u32 %s517_s0, 4  ;;  %s20_s25 = int_to_ptr.hbm [resolvable:$true] %s19_s25 }
   0x4   :  { %s32_s22 = sshll.u32 %s440_s21, 4  ;;  %s441_s26 = smov [#allocation2]   ;;  %s33_s22 = int_to_ptr.vmem [resolvable:$true] %s32_s22 }
   0x5   :  { %35 = dma.hbm_to_vmem [thread:$0]  %s31_s20, 32, %s33_s22, [#allocation6]  }
   0x6   :  { %s21_s27 = sshll.u32 %s441_s26, 4  ;;  %s40_s30 = sshll.u32 %s519_s2, 4  ;;  %s22_s27 = int_to_ptr.vmem [resolvable:$true] %s21_s27  ;;  %s41_s30 = int_to_ptr.hbm [resolvable:$true] %s40_s30 }
   0x7   :  { %24 = dma.hbm_to_vmem [thread:$0]  %s20_s25, 16, %s22_s27, [#allocation3]  }
   0x8   :  { %s442_s1 = smov [#allocation7]   ;;  %s55_s9 = sshll.u32 %s521_s4, 4  ;;  %s56_s9 = int_to_ptr.hbm [resolvable:$true] %s55_s9 }
   0x9   :  { %s42_s6 = sshll.u32 %s442_s1, 4  ;;  %s443_s10 = smov 128   ;;  %s43_s6 = int_to_ptr.vmem [resolvable:$true] %s42_s6 }
   0xa   :  { %s444_s0 = smov 8   ;;  %s445_s11 = smov [#allocation8]  }
   0xb   :  { %48 = dma.hbm_to_vmem [thread:$0]  %s41_s30, 512, %s43_s6, [#allocation6], %s443_s10, %s443_s10, %s444_s0  }
   0xc   :  { %s57_s12 = sshll.u32 %s445_s11, 4  ;;  %s58_s12 = int_to_ptr.vmem [resolvable:$true] %s57_s12 }
   0xd   :  { %63 = dma.hbm_to_vmem [thread:$0]  %s56_s9, 640, %s58_s12, [#allocation9], %s443_s10, %s443_s10, %s444_s0  }
   0xe   :  { %432 = dma.done.wait [#allocation3], 16  }
   0xf   :  { %433 = vsyncadd [#allocation3], 4294967280 }
  0x10   :  { %434 = dma.done.wait [#allocation6], 544  }
  0x11   :  { %435 = vsyncadd [#allocation6], 4294966752 }
  0x12   :  { %436 = dma.done.wait [#allocation9], 640  }
  0x13   :  { %437 = vsyncadd [#allocation9], 4294966656  ;;  %vm97_vm0 = vcmask 1041408   ;;  %vm93_vm1 = vcmask 15360   ;;  %v92_v0 = vld [vmem:[#allocation5] sm:$0x3] }
  0x14   :  { %v91_v1 = vld [vmem:[#allocation2] sm:$0x1]  ;;  %284 = vmatpush.msk.msra.mxu0 %vm97_vm0, %v92_v0  ;;  %s446_s13 = smov 64   ;;  %s447_s14 = smov 32   ;;  %v82_v12 = vld [vmem:[#allocation7 + $0x10] sm:$0xff]  ;;  %v81_v13 = vld [vmem:[#allocation7 + $0x8] sm:$0xff] }
  0x15   :  { %285 = vmatmul.msk.f32.vlgmr.msra.gmra.mxu0 %vm93_vm1, %v91_v1  ;;  %v84_v2 = vld [vmem:[%s520_s3] sm:$0x1]  ;;  %s448_s15 = smov 96   ;;  %v80_v16 = vld [vmem:[#allocation7] sm:$0xff]  ;;  %vm138_vm2 = vcmask 261120   ;;  %v88_v46 = vld [vmem:[#allocation8 + $0x10] sm:$0xff] }
  0x16   :  { %v83_v11 = vld [vmem:[#allocation7 + $0x18] sm:$0xff]  ;;  %v87_v47 = vld [vmem:[#allocation8 + $0x8] sm:$0xff]  ;;  %v86_v48 = vld [vmem:[#allocation8] sm:$0xff]  ;;  %vm235_vm3 = vcmask 1040384   ;;  %s272_s21 = sshll.u32 %s522_s5, 4  ;;  %s273_s21 = int_to_ptr.hbm [resolvable:$true] %s272_s21 }
  0x17   :  { %153 = vmatpush.msra.mxu1 %v83_v11  ;;  %202 = vmatpush.msra.mxu2 %v83_v11  ;;  %v85_v18 = vld [vmem:[%s520_s3 + $0x1] sm:$0x1]  ;;  %v299_v56 = vld [vmem:[#allocation8 + $0x20] ss:$0 sm:$0xff]  ;;  %s449_s3 = smov [#allocation10]  }
  0x18   :  { %v89_v45 = vld [vmem:[#allocation8 + $0x18] sm:$0xff]  ;;  %s270_s18 = sshll.u32 %s449_s3, 4  ;;  %s271_s18 = int_to_ptr.vmem [resolvable:$true] %s270_s18 }
  0x19   :  { %154 = vmatpush.msra.mxu1 %v82_v12  ;;  %203 = vmatpush.msra.mxu2 %v82_v12 }
  0x1a   :  { %256 = vmatpush.msra.mxu3 %v89_v45 }
  0x1b   :  { %155 = vmatpush.msra.mxu1 %v81_v13  ;;  %204 = vmatpush.msra.mxu2 %v81_v13 }
  0x1c   :  { %257 = vmatpush.msra.mxu3 %v88_v46 }
  0x1d   :  { %156 = vmatpush.msra.mxu1 %v80_v16  ;;  %205 = vmatpush.msra.mxu2 %v80_v16 }
  0x1e   :  { %258 = vmatpush.msra.mxu3 %v87_v47 }
  0x20   :  { %259 = vmatpush.msra.mxu3 %v86_v48 }
  0x92   :  { %v118_v3 = vpop.f32.mrf.mxu0 }
  0x93   :  { %v119_v4 = vadd.f32 %v118_v3, %v84_v2 }
  0x95   :  { %300 = vtanh.f32 %v119_v4 }
  0x9b   :  { %v301_v5 = vpop.eup %300 }
  0x9c   :  { %125 = vrot.lane.b32.xlu0 %v301_v5, %s446_s13  ;;  %v122_v6 = vmul.f32 0.5, %v301_v5 }
  0x9e   :  { %v123_v7 = vadd.f32 0.5, %v122_v6 }
 0x10e   :  { %v126_v8 = vpop.permute.xlu0 %125 }
 0x10f   :  { %v128_v9 = vmul.f32 %v126_v8, %v123_v7 }
 0x111   :  { %302 = vtanh.f32 %v128_v9  ;;  %165 = vrot.lane.b32.xlu2 %v128_v9, %s447_s14 }
 0x117   :  { %v303_v10 = vpop.eup %302 }
 0x118   :  { %131 = vrot.lane.b32.xlu0 %v303_v10, %s448_s15 }
 0x16b   :  { %v166_v26 = vpop.permute.xlu2 %165 }
 0x18a   :  { %v132_v14 = vpop.permute.xlu0 %131 }
 0x18b   :  { %v134_v15 = vmul.f32 %v132_v14, %v123_v7 }
 0x18d   :  { %136 = vrot.lane.b32.xlu1 %v134_v15, %s447_s14 }
 0x1ff   :  { %v137_v17 = vpop.permute.xlu1 %136 }
 0x200   :  { %286 = vmatmul.msk.f32.vlgmr.msra.gmra.mxu1 %vm138_vm2, %v137_v17 }
 0x27d   :  { %v158_v19 = vpop.f32.mrf.mxu1 }
 0x27e   :  { %v159_v20 = vadd.f32 %v158_v19, %v85_v18 }
 0x280   :  { %304 = vtanh.f32 %v159_v20 }
 0x286   :  { %v305_v21 = vpop.eup %304 }
 0x287   :  { %170 = vrot.lane.b32.xlu1 %v305_v21, %s446_s13  ;;  %v162_v22 = vmul.f32 0.5, %v305_v21 }
 0x289   :  { %v163_v23 = vadd.f32 0.5, %v162_v22 }
 0x28b   :  { %v168_v27 = vmul.f32 %v166_v26, %v163_v23 }
 0x2f9   :  { %v171_v24 = vpop.permute.xlu1 %170 }
 0x2fa   :  { %v173_v25 = vmul.f32 %v171_v24, %v163_v23 }
 0x2fc   :  { %175 = vrot.lane.b32.xlu2 %v173_v25, %s447_s14 }
 0x356   :  { %v176_v28 = vpop.permute.xlu2 %175 }
 0x357   :  { %v178_v29 = vadd.f32 %v176_v28, %v168_v27 }
 0x359   :  { %306 = vtanh.f32 %v178_v29 }
 0x35f   :  { %v307_v30 = vpop.eup %306 }
 0x360   :  { %181 = vrot.lane.b32.xlu0 %v307_v30, %s446_s13 }
 0x3d2   :  { %v182_v31 = vpop.permute.xlu0 %181 }
 0x3d3   :  { %v184_v32 = vmul.f32 %v182_v31, %v163_v23 }
 0x3d5   :  { %186 = vrot.lane.b32.xlu1 %v184_v32, %s447_s14  ;;  %v230_v49 = vrot.slane %v184_v32, 7 }
 0x3d7   :  { %v236_v53 = vsel %vm235_vm3, %v134_v15, %v230_v49 }
 0x447   :  { %v187_v33 = vpop.permute.xlu1 %186 }
 0x448   :  { %287 = vmatmul.msk.f32.vlgmr.msra.gmra.mxu2 %vm138_vm2, %v187_v33 }
 0x4cb   :  { %v207_v34 = vpop.f32.mrf.mxu2 }
 0x4cc   :  { %v208_v35 = vadd.f32 %v207_v34, %v85_v18 }
 0x4ce   :  { %308 = vtanh.f32 %v208_v35 }
 0x4d4   :  { %v309_v36 = vpop.eup %308 }
 0x4d5   :  { %215 = vrot.lane.b32.xlu2 %v309_v36, %s446_s13  ;;  %v211_v37 = vmul.f32 0.5, %v309_v36 }
 0x4d7   :  { %v212_v38 = vadd.f32 0.5, %v211_v37 }
 0x4d9   :  { %v213_v41 = vmul.f32 %v212_v38, %v178_v29 }
 0x52f   :  { %v216_v39 = vpop.permute.xlu2 %215 }
 0x530   :  { %v218_v40 = vmul.f32 %v216_v39, %v212_v38 }
 0x532   :  { %220 = vrot.lane.b32.xlu0 %v218_v40, %s447_s14 }
 0x5a4   :  { %v221_v42 = vpop.permute.xlu0 %220 }
 0x5a5   :  { %v223_v43 = vadd.f32 %v221_v42, %v213_v41 }
 0x5a7   :  { %310 = vtanh.f32 %v223_v43 }
 0x5ad   :  { %v311_v44 = vpop.eup %310 }
 0x5ae   :  { %226 = vrot.lane.b32.xlu1 %v311_v44, %s446_s13 }
 0x620   :  { %v227_v50 = vpop.permute.xlu1 %226 }
 0x621   :  { %v229_v51 = vmul.f32 %v227_v50, %v212_v38 }
 0x623   :  { %v233_v52 = vrot.slane %v229_v51, 6 }
 0x625   :  { %v237_v54 = vsel %vm97_vm0, %v236_v53, %v233_v52 }
 0x626   :  { %240 = vrot.lane.b32.xlu2 %v237_v54, %s447_s14 }
 0x680   :  { %v241_v55 = vpop.permute.xlu2 %240 }
 0x681   :  { %288 = vmatmul.msk.f32.vlgmr.msra.gmra.mxu3 %vm138_vm2, %v241_v55 }
 0x704   :  { %v261_v57 = vpop.f32.mrf.mxu3 }
 0x705   :  { %v262_v58 = vadd.f32 %v299_v56, %v261_v57 }
 0x707   :  { %264 = vst [vmem:[#allocation10] sm:$0x7] %v262_v58 }
 0x708   :  { %275 = dma.vmem_to_hbm [thread:$0]  %s271_s18, 64, %s273_s21, [#allocation4]  }
 0x709   :  { %438 = dma.done.wait [#allocation4], 64  }
 0x70a   :  { %439 = vsyncadd [#allocation4], 4294967232 }
 0x70b   :  { %280 = vsyncpa [#allocation3], 1 }
 0x70c   :  { %281 = vsyncpa [#allocation6], 1 }
 0x70d   :  { %282 = vsyncpa [#allocation9], 1 }
 0x70e   :  { %283 = vsyncpa [#allocation4], 1 }

</bundles_post_ra>
